<compile_context>
chip_gen: v6e
topology: v6e:2x2x1
jax: 0.10.0
libtpu: 0.0.40
codegen_flags: <defaults>
</compile_context>

<pallas_src>
import jax
import jax.numpy as jnp
from jax.experimental import pallas as pl
from jax.experimental.pallas import tpu as pltpu


# ---------------------------------------------------------------------------
# Helpers
# ---------------------------------------------------------------------------
def _round_up(x, m):
    return (x + m - 1) // m * m


def _vmem_budget():
    """Generation-aware (per-step working-set budget, vmem_limit_bytes)."""
    try:
        cap = pltpu.get_tpu_info().vmem_capacity_bytes
    except Exception:  # pragma: no cover - be conservative if query fails
        cap = 64 << 20
    if cap >= (100 << 20):          # v5e / v6e: 128 MiB physical VMEM
        return 48 << 20, 64 << 20
    return 20 << 20, 32 << 20       # v7x: 64 MiB physical per TensorCore


def _pick_tile_n(n, cpad, itemsize, budget_bytes):
    """Largest batch tile whose per-grid-step working set fits the budget.

    Working set per step = double-buffered input logits (2 * itemsize bytes
    per element) + ~4 tile-sized f32 temporaries materialized in the body
    (f32 upcast, masked copy, exp, one-hot select).
    """
    g = 8 if itemsize >= 4 else 16          # sublane granularity (f32 / bf16)
    per_row = cpad * (2 * itemsize + 4 * 4)
    tn = min(_round_up(n, g), 1024)
    while tn > g and tn * per_row > budget_bytes:
        tn = max(g, _round_up(tn // 2, g))
    if tn >= n:
        return n                            # single tile == full batch dim
    return tn


# ---------------------------------------------------------------------------
# Kernel
# ---------------------------------------------------------------------------
def _make_hce_kernel(num_n_tiles, t_half):
    def kernel(nclass_ref, logits_ref, targets_ref, out_ref, mask_ref):
        p = pl.program_id(0)          # megacore half (splits the batch tiles)
        h = pl.program_id(1)          # hierarchy level
        j = pl.program_id(2)          # local batch tile (trailing reduction axis)
        c_h = nclass_ref[h]           # true #classes at this level (int32)

        @pl.when(j == 0)
        def _init():
            out_ref[...] = jnp.zeros_like(out_ref)
            # hoisted per-level class-column mask: 0 on real classes, -1e30 on pad
            lane = jax.lax.broadcasted_iota(jnp.int32, mask_ref.shape, 1)
            mask_ref[...] = jnp.where(lane < c_h, 0.0, -1e30).astype(jnp.float32)

        tile_idx = p * t_half + j

        @pl.when(tile_idx < num_n_tiles)   # skip duplicated tiles of the 2-way split
        def _accum():
            x = logits_ref[0].astype(jnp.float32)    # (TN, Cpad), bf16 upcast
            t = targets_ref[0]                       # (TN, 1) int32
            tn, cpad = x.shape

            # masked, numerically-stable log-sum-exp over the real classes
            xm = x + mask_ref[...]                   # broadcast (1, Cpad) add
            m = jnp.max(xm, axis=1, keepdims=True)   # (TN, 1)
            e = jnp.exp(xm - m)                      # padded lanes underflow to 0
            lse = m + jnp.log(jnp.sum(e, axis=1, keepdims=True))
            # TODO(synk): on v7x the lane sums could be offloaded to the idle
            # MXU (e @ ones(Cpad,128)); verify with a bundle dump first.

            # logit of the target class via one-hot select (gather-free)
            col = jax.lax.broadcasted_iota(jnp.int32, (tn, cpad), 1)
            correct = jnp.sum(jnp.where(col == t, x, jnp.float32(0.0)),
                              axis=1, keepdims=True)                     # (TN, 1)

            valid = (t >= 0) & (t < c_h)             # ragged tail / ignored targets
            per_sample = jnp.where(valid, lse - correct, jnp.float32(0.0))

            loss_p = jnp.sum(per_sample)             # partial CE sum for this tile
            count_p = jnp.sum(valid.astype(jnp.float32))

            lane = jax.lax.broadcasted_iota(jnp.int32, out_ref.shape, 3)
            out_ref[...] += (jnp.where(lane == 0, loss_p, jnp.float32(0.0))
                             + jnp.where(lane == 1, count_p, jnp.float32(0.0)))

    return kernel


# ---------------------------------------------------------------------------
# Wrapper
# ---------------------------------------------------------------------------
def hierarchical_ce_pallas(logits, targets, num_classes, alpha):
    """Hierarchical cross-entropy loss (matches the PyTorch module forward).

    logits:      (L, N, Cpad) bfloat16 (preferred) or float32, class axis
                 zero-padded, Cpad a multiple of 128
    targets:     (L, N, 1)    int32 (targets < 0 or >= num_classes[h] ignored)
    num_classes: (L,)         int32 true class counts per level
    alpha:       scalar float32
    """
    L, N, Cpad = logits.shape
    assert Cpad % 128 == 0, "class axis must be padded to a multiple of 128"
    # TODO(synk): very large vocabularies (Cpad so big even a minimum tile blows
    # VMEM) would need class-axis tiling with an online (flash-style) softmax.
    # NOTE: runtime scales with Cpad, not the true class count; pack small
    # levels or use per-level lane padding if Cpad >> num_classes[h].

    budget, vmem_limit = _vmem_budget()
    itemsize = jnp.dtype(logits.dtype).itemsize
    tile_n = _pick_tile_n(N, Cpad, itemsize, budget)
    num_n_tiles = (N + tile_n - 1) // tile_n

    # Pad only the (tiny) targets array so every grid step sees in-bounds,
    # explicitly-invalid targets for the ragged tail; logits stay unpadded
    # (the ragged final block is read as-is and masked through `valid`).
    n_pad = num_n_tiles * tile_n
    if n_pad != N:
        targets = jnp.pad(targets, ((0, 0), (0, n_pad - N), (0, 0)),
                          constant_values=-1)

    # split the batch tiles across the two v7x TensorCores (no-op on v5e/v6e)
    n_split = 2 if num_n_tiles > 1 else 1
    t_half = (num_n_tiles + n_split - 1) // n_split

    def _nb(p, j):  # clamped batch-tile block index (duplicates are skipped in-kernel)
        return jnp.minimum(p * t_half + j, num_n_tiles - 1)

    logits_spec = pl.BlockSpec((1, tile_n, Cpad),
                               lambda p, h, j, nc: (h, _nb(p, j), 0))
    targets_spec = pl.BlockSpec((1, tile_n, 1),
                                lambda p, h, j, nc: (h, _nb(p, j), 0))

    cost = pl.CostEstimate(
        flops=int(8 * L * N * Cpad),
        transcendentals=int(L * N * Cpad),
        bytes_accessed=int(logits.size * itemsize + targets.size * 4
                           + n_split * L * 128 * 4),
    )

    out = pl.pallas_call(
        _make_hce_kernel(num_n_tiles, t_half),
        out_shape=jax.ShapeDtypeStruct((n_split, L, 1, 128), jnp.float32),
        grid_spec=pltpu.PrefetchScalarGridSpec(
            num_scalar_prefetch=1,
            grid=(n_split, L, t_half),
            in_specs=[logits_spec, targets_spec],
            out_specs=pl.BlockSpec((1, 1, 1, 128),
                                   lambda p, h, j, nc: (p, h, 0, 0)),
            scratch_shapes=[pltpu.VMEM((1, Cpad), jnp.float32)],
        ),
        compiler_params=pltpu.CompilerParams(
            dimension_semantics=("parallel", "parallel", "arbitrary"),
            vmem_limit_bytes=vmem_limit,
        ),
        cost_estimate=cost,
    )(num_classes, logits, targets)

    acc = jnp.sum(out, axis=0)               # (L, 1, 128): merge the core halves
    loss_sums = acc[:, 0, 0]                 # (L,)
    counts = acc[:, 0, 1]                    # (L,)

    # lambda_h = exp(-alpha * (L - 1 - h)); levels with no valid targets skipped
    lam = jnp.exp(-alpha * (L - 1 - jnp.arange(L, dtype=jnp.float32)))
    mean_loss = jnp.where(counts > 0, loss_sums / jnp.maximum(counts, 1.0), 0.0)
    return jnp.sum(lam * mean_loss)


# ---------------------------------------------------------------------------
# Plain-JAX reference mirroring the PyTorch forward
# ---------------------------------------------------------------------------
def hierarchical_ce_reference(outputs, targets_list, alpha):
    L = len(outputs)
    total = jnp.float32(0.0)
    for h, (out, tgt) in enumerate(zip(outputs, targets_list)):
        c = out.shape[1]
        valid = (tgt >= 0) & (tgt < c)
        lam = jnp.exp(-alpha * (L - 1 - h))
        lse = jax.scipy.special.logsumexp(out, axis=1)
        tgt_safe = jnp.clip(tgt, 0, c - 1)
        correct = jnp.take_along_axis(out, tgt_safe[:, None], axis=1)[:, 0]
        per = lse - correct
        cnt = jnp.sum(valid.astype(jnp.float32))
        mean = jnp.where(cnt > 0,
                         jnp.sum(jnp.where(valid, per, 0.0)) / jnp.maximum(cnt, 1.0),
                         0.0)
        total = total + lam * mean
    return total


if __name__ == "__main__":
    key = jax.random.PRNGKey(0)

    # synthetic hierarchy: 3 levels, 8 samples, class counts per level
    num_levels = 3
    N = 8
    classes = [4, 7, 10]
    Cpad = _round_up(max(classes), 128)      # 128
    alpha = jnp.float32(0.5)                 # deterministic "parameter" init

    keys = jax.random.split(key, 2 * num_levels)
    outputs = []
    targets_list = []
    for h, c in enumerate(classes):
        out = jax.random.normal(keys[2 * h], (N, c), dtype=jnp.float32)
        tgt = jax.random.randint(keys[2 * h + 1], (N,), 0, c).astype(jnp.int32)
        outputs.append(out)
        targets_list.append(tgt)

    # inject some invalid targets (ignored by the loss, as in the torch module)
    targets_list[0] = targets_list[0].at[0].set(-1)
    targets_list[1] = targets_list[1].at[3].set(classes[1] + 5)

    # pack into the kernel layout; feed logits as bf16 (kernel is HBM-BW bound)
    logits = jnp.zeros((num_levels, N, Cpad), dtype=jnp.float32)
    tgts = jnp.zeros((num_levels, N, 1), dtype=jnp.int32)
    for h, c in enumerate(classes):
        logits = logits.at[h, :, :c].set(outputs[h])
        tgts = tgts.at[h, :, 0].set(targets_list[h])
    logits_bf16 = logits.astype(jnp.bfloat16)
    num_classes = jnp.array(classes, dtype=jnp.int32)

    total = hierarchical_ce_pallas(logits_bf16, tgts, num_classes, alpha)
    total = jax.block_until_ready(total)

    # reference computed on the same bf16-rounded logits for a tight tolerance
    outputs_r = [o.astype(jnp.bfloat16).astype(jnp.float32) for o in outputs]
    ref = hierarchical_ce_reference(outputs_r, targets_list, alpha)
    assert jnp.allclose(total, ref, rtol=1e-4, atol=1e-4), (total, ref)

    print("KERNEL_OK")
</pallas_src>

<mosaic_0001>
module attributes {stable_mosaic.version = 11 : i64} {
  func.func @kernel(%arg0: i32, %arg1: i32, %arg2: i32, %arg3: memref<3xi32, #tpu.memory_space<smem>>, %arg4: memref<1x8x128xbf16, #tpu.memory_space<vmem>>, %arg5: memref<1x8x1xi32, #tpu.memory_space<vmem>>, %arg6: memref<1x1x1x128xf32, #tpu.memory_space<vmem>>, %arg7: memref<1x128xf32, #tpu.memory_space<vmem>>) attributes {dimension_semantics = [#tpu.dimension_semantics<parallel>, #tpu.dimension_semantics<parallel>, #tpu.dimension_semantics<arbitrary>], iteration_bounds = array<i64: 1, 3, 1>, scalar_prefetch = 1 : i64, scratch_operands = 1 : i64, tpu.core_type = #tpu.core_type<tc>, window_params = [{transform_indices = @transform_0, window_bounds = array<i64: 1, 8, 128>}, {transform_indices = @transform_1, window_bounds = array<i64: 1, 8, 1>}, {transform_indices = @transform_2, window_bounds = array<i64: 1, 1, 1, 128>}]} {
    %0 = arith.index_cast %arg1 : i32 to index
    %1 = memref.load %arg3[%0] : memref<3xi32, #tpu.memory_space<smem>>
    %c0_i32 = arith.constant 0 : i32
    %2 = arith.cmpi eq, %arg2, %c0_i32 : i32
    %3 = arith.extui %2 : i1 to i32
    %c0_i32_0 = arith.constant 0 : i32
    %4 = arith.cmpi ne, %3, %c0_i32_0 : i32
    scf.if %4 {
      %cst = arith.constant 0.000000e+00 : f32
      %10 = vector.broadcast %cst : f32 to vector<1x1x1x128xf32>
      %c0 = arith.constant 0 : index
      %c0_3 = arith.constant 0 : index
      %c0_4 = arith.constant 0 : index
      %c0_5 = arith.constant 0 : index
      %11 = vector.load %arg6[%c0, %c0_3, %c0_4, %c0_5] : memref<1x1x1x128xf32, #tpu.memory_space<vmem>>, vector<1x1x1x128xf32>
      tpu.vector_store %arg6[%c0, %c0_3, %c0_4, %c0_5], %10 {strides = array<i32>} : memref<1x1x1x128xf32, #tpu.memory_space<vmem>>, vector<1x1x1x128xf32>,
      %12 = tpu.iota {dimensions = array<i32: 1>} : vector<1x128xi32>
      %13 = vector.broadcast %1 : i32 to vector<1x128xi32>
      %14 = arith.cmpi slt, %12, %13 : vector<1x128xi32>
      %cst_6 = arith.constant 0.000000e+00 : f32
      %cst_7 = arith.constant -1.000000e+30 : f32
      %15 = vector.broadcast %cst_6 : f32 to vector<1x128xf32>
      %16 = vector.broadcast %cst_7 : f32 to vector<1x128xf32>
      %17 = arith.select %14, %15, %16 : vector<1x128xi1>, vector<1x128xf32>
      %c0_8 = arith.constant 0 : index
      %c0_9 = arith.constant 0 : index
      %18 = vector.load %arg7[%c0_8, %c0_9] : memref<1x128xf32, #tpu.memory_space<vmem>>, vector<1x128xf32>
      tpu.vector_store %arg7[%c0_8, %c0_9], %17 {strides = array<i32>} : memref<1x128xf32, #tpu.memory_space<vmem>>, vector<1x128xf32>,
    } else {
    }
    %c1_i32 = arith.constant 1 : i32
    %5 = arith.muli %arg0, %c1_i32 : i32
    %6 = arith.addi %5, %arg2 : i32
    %c1_i32_1 = arith.constant 1 : i32
    %7 = arith.cmpi slt, %6, %c1_i32_1 : i32
    %8 = arith.extui %7 : i1 to i32
    %c0_i32_2 = arith.constant 0 : i32
    %9 = arith.cmpi ne, %8, %c0_i32_2 : i32
    scf.if %9 {
      %c0 = arith.constant 0 : index
      %c0_3 = arith.constant 0 : index
      %c0_4 = arith.constant 0 : index
      %10 = vector.load %arg4[%c0, %c0_3, %c0_4] : memref<1x8x128xbf16, #tpu.memory_space<vmem>>, vector<1x8x128xbf16>
      %11 = vector.shape_cast %10 : vector<1x8x128xbf16> to vector<8x128xbf16>
      %12 = arith.extf %11 : vector<8x128xbf16> to vector<8x128xf32>
      %c0_5 = arith.constant 0 : index
      %c0_6 = arith.constant 0 : index
      %c0_7 = arith.constant 0 : index
      %13 = vector.load %arg5[%c0_5, %c0_6, %c0_7] : memref<1x8x1xi32, #tpu.memory_space<vmem>>, vector<1x8x1xi32>
      %14 = vector.shape_cast %13 : vector<1x8x1xi32> to vector<8x1xi32>
      %c0_8 = arith.constant 0 : index
      %c0_9 = arith.constant 0 : index
      %15 = vector.load %arg7[%c0_8, %c0_9] : memref<1x128xf32, #tpu.memory_space<vmem>>, vector<1x128xf32>
      %16 = vector.broadcast %15 : vector<1x128xf32> to vector<8x128xf32>
      %17 = arith.addf %12, %16 : vector<8x128xf32>
      %cst = arith.constant dense<0xFF800000> : vector<8xf32>
      %18 = vector.multi_reduction <maximumf>, %17, %cst [1] : vector<8x128xf32> to vector<8xf32>
      %19 = vector.shape_cast %18 : vector<8xf32> to vector<8x1xf32>
      %20 = vector.broadcast %19 : vector<8x1xf32> to vector<8x128xf32>
      %21 = arith.subf %17, %20 : vector<8x128xf32>
      %22 = math.exp %21 : vector<8x128xf32>
      %cst_10 = arith.constant dense<0.000000e+00> : vector<8xf32>
      %23 = vector.multi_reduction <add>, %22, %cst_10 [1] : vector<8x128xf32> to vector<8xf32>
      %24 = vector.shape_cast %23 : vector<8xf32> to vector<8x1xf32>
      %25 = math.log %24 : vector<8x1xf32>
      %26 = arith.addf %19, %25 : vector<8x1xf32>
      %27 = tpu.iota {dimensions = array<i32: 1>} : vector<8x128xi32>
      %28 = vector.broadcast %14 : vector<8x1xi32> to vector<8x128xi32>
      %29 = arith.cmpi eq, %27, %28 : vector<8x128xi32>
      %cst_11 = arith.constant 0.000000e+00 : f32
      %30 = vector.broadcast %cst_11 : f32 to vector<8x128xf32>
      %31 = arith.select %29, %12, %30 : vector<8x128xi1>, vector<8x128xf32>
      %cst_12 = arith.constant dense<0.000000e+00> : vector<8xf32>
      %32 = vector.multi_reduction <add>, %31, %cst_12 [1] : vector<8x128xf32> to vector<8xf32>
      %33 = vector.shape_cast %32 : vector<8xf32> to vector<8x1xf32>
      %c0_i32_13 = arith.constant 0 : i32
      %34 = vector.broadcast %c0_i32_13 : i32 to vector<8x1xi32>
      %35 = arith.cmpi sge, %14, %34 : vector<8x1xi32>
      %36 = vector.broadcast %1 : i32 to vector<8x1xi32>
      %37 = arith.cmpi slt, %14, %36 : vector<8x1xi32>
      %38 = arith.andi %35, %37 : vector<8x1xi1>
      %39 = arith.subf %26, %33 : vector<8x1xf32>
      %cst_14 = arith.constant 0.000000e+00 : f32
      %40 = vector.broadcast %cst_14 : f32 to vector<8x1xf32>
      %41 = arith.select %38, %39, %40 : vector<8x1xi1>, vector<8x1xf32>
      %42 = vector.shape_cast %41 : vector<8x1xf32> to vector<1x8x1xf32>
      %cst_15 = arith.constant dense<0.000000e+00> : vector<1xf32>
      %43 = vector.multi_reduction <add>, %42, %cst_15 [1, 2] : vector<1x8x1xf32> to vector<1xf32>
      %44 = vector.shape_cast %43 : vector<1xf32> to vector<1x1x1xf32>
      %45 = vector.extract %44[0, 0, 0] : f32 from vector<1x1x1xf32>
      %46 = arith.extui %38 : vector<8x1xi1> to vector<8x1xi32>
      %47 = arith.sitofp %46 : vector<8x1xi32> to vector<8x1xf32>
      %48 = vector.shape_cast %47 : vector<8x1xf32> to vector<1x8x1xf32>
      %cst_16 = arith.constant dense<0.000000e+00> : vector<1xf32>
      %49 = vector.multi_reduction <add>, %48, %cst_16 [1, 2] : vector<1x8x1xf32> to vector<1xf32>
      %50 = vector.shape_cast %49 : vector<1xf32> to vector<1x1x1xf32>
      %51 = vector.extract %50[0, 0, 0] : f32 from vector<1x1x1xf32>
      %52 = tpu.iota {dimensions = array<i32: 3>} : vector<1x1x1x128xi32>
      %c0_17 = arith.constant 0 : index
      %c0_18 = arith.constant 0 : index
      %c0_19 = arith.constant 0 : index
      %c0_20 = arith.constant 0 : index
      %53 = vector.load %arg6[%c0_17, %c0_18, %c0_19, %c0_20] : memref<1x1x1x128xf32, #tpu.memory_space<vmem>>, vector<1x1x1x128xf32>
      %c0_i32_21 = arith.constant 0 : i32
      %54 = vector.broadcast %c0_i32_21 : i32 to vector<1x1x1x128xi32>
      %55 = arith.cmpi eq, %52, %54 : vector<1x1x1x128xi32>
      %cst_22 = arith.constant 0.000000e+00 : f32
      %56 = vector.broadcast %45 : f32 to vector<1x1x1x128xf32>
      %57 = vector.broadcast %cst_22 : f32 to vector<1x1x1x128xf32>
      %58 = arith.select %55, %56, %57 : vector<1x1x1x128xi1>, vector<1x1x1x128xf32>
      %c1_i32_23 = arith.constant 1 : i32
      %59 = vector.broadcast %c1_i32_23 : i32 to vector<1x1x1x128xi32>
      %60 = arith.cmpi eq, %52, %59 : vector<1x1x1x128xi32>
      %cst_24 = arith.constant 0.000000e+00 : f32
      %61 = vector.broadcast %51 : f32 to vector<1x1x1x128xf32>
      %62 = vector.broadcast %cst_24 : f32 to vector<1x1x1x128xf32>
      %63 = arith.select %60, %61, %62 : vector<1x1x1x128xi1>, vector<1x1x1x128xf32>
      %64 = arith.addf %58, %63 : vector<1x1x1x128xf32>
      %65 = arith.addf %53, %64 : vector<1x1x1x128xf32>
      %c0_25 = arith.constant 0 : index
      %c0_26 = arith.constant 0 : index
      %c0_27 = arith.constant 0 : index
      %c0_28 = arith.constant 0 : index
      %66 = vector.load %arg6[%c0_25, %c0_26, %c0_27, %c0_28] : memref<1x1x1x128xf32, #tpu.memory_space<vmem>>, vector<1x1x1x128xf32>
      tpu.vector_store %arg6[%c0_25, %c0_26, %c0_27, %c0_28], %65 {strides = array<i32>} : memref<1x1x1x128xf32, #tpu.memory_space<vmem>>, vector<1x1x1x128xf32>,
    } else {
    }
    return
  }
  func.func @transform_0(%arg0: i32, %arg1: i32, %arg2: i32, %arg3: memref<3xi32, #tpu.memory_space<smem>>) -> (i32, i32, i32) {
    %c1_i32 = arith.constant 1 : i32
    %0 = arith.muli %arg0, %c1_i32 : i32
    %1 = arith.addi %0, %arg2 : i32
    %c0_i32 = arith.constant 0 : i32
    %2 = arith.minsi %1, %c0_i32 : i32
    %c0_i32_0 = arith.constant 0 : i32
    %c0_i32_1 = arith.constant 0 : i32
    return %arg1, %2, %c0_i32_0 : i32, i32, i32
  }
  func.func @transform_1(%arg0: i32, %arg1: i32, %arg2: i32, %arg3: memref<3xi32, #tpu.memory_space<smem>>) -> (i32, i32, i32) {
    %c1_i32 = arith.constant 1 : i32
    %0 = arith.muli %arg0, %c1_i32 : i32
    %1 = arith.addi %0, %arg2 : i32
    %c0_i32 = arith.constant 0 : i32
    %2 = arith.minsi %1, %c0_i32 : i32
    %c0_i32_0 = arith.constant 0 : i32
    %c0_i32_1 = arith.constant 0 : i32
    return %arg1, %2, %c0_i32_0 : i32, i32, i32
  }
  func.func @transform_2(%arg0: i32, %arg1: i32, %arg2: i32, %arg3: memref<3xi32, #tpu.memory_space<smem>>) -> (i32, i32, i32, i32) {
    %c0_i32 = arith.constant 0 : i32
    %c0_i32_0 = arith.constant 0 : i32
    %c0_i32_1 = arith.constant 0 : i32
    return %arg0, %arg1, %c0_i32, %c0_i32_0 : i32, i32, i32, i32
  }
}

</mosaic_0001>

<bundles_post_ra>
// kernel: tpu_custom_call.1
= control target key start
LH: loop header
LB: loop body
LE: loop exit
PB: predicated region body
PF: predicated region fallthrough
CT: control target
= control target key end

     0   :  { %s756_s0 = inlined_call_operand.vmem [shape: s32[3], index: 0, kind: input, shape index: {}]   ;;  %s757_s1 = inlined_call_operand.vmem [shape: bf16[3,8,128], index: 1, kind: input, shape index: {}]   ;;  %s758_s2 = inlined_call_operand.vmem [shape: s32[3,8,1], index: 2, kind: input, shape index: {}]   ;;  %s759_s3 = inlined_call_operand.hbm [shape: f32[1,3,1,128], index: 3, kind: output, shape index: {}]  }
   0x1   :  { %s8_s14 = sshll.u32 %s756_s0, 4  ;;  %s9_s14 = int_to_ptr.vmem [resolvable:$true] %s8_s14 }
   0x2   :  { %s514_s15 = scalar_lea.vmem %s9_s14, 16  ;;  %p519_p1 = scmp.lt.s32.totalorder %s9_s14, %s9_s14 }
   0x3   :  { %p515_p0 = scmp.ne.s32.totalorder %s9_s14, %s514_s15  ;;  %p520_p2 = scmp.lt.s32.totalorder %s514_s15, %s514_s15 }
   0x5   :  { %p521_p3 = por %p520_p2, %p519_p1 }
   0x7   :  { %p522_p4 = pnand %p521_p3, %p515_p0 }
   0x9   :  { %525 = shalt.err (!%p522_p4)  }
   0xa   :  { %s606_s16 = smov [#allocation4]  }
   0xb   :  { %11 = dma.vmem_to_smem %s9_s14, 16, %s606_s16, [#allocation3] }
   0xc   :  { %576 = dma.done.wait [#allocation3], 16 }
   0xd   :  { %577 = vsyncadd [#allocation3], 4294967280 }
   0xe   :  { %13 = sfence }
   0xf   :  { %14 = vsyncpa [#allocation6], 0 }
  0x10   :  { %16 = vsyncpa [#allocation6 + $0x1], 0  ;;  %s634_s17 = smov 0   ;;  %s636_s18 = smov 0  }
  0x11   :  { %s638_s0 = smov 0   ;;  %s640_s19 = smov 0  }
  0x12   :  { %s642_s20 = smov 0   ;;  %s644_s21 = smov 0  }
  0x13 LB: > { %s434_s22 = sadd.s32 4294967295, %s604_s21   ;;  %s435_s23 = sadd.s32 4294967294, %s604_s21   ;;  %s604_s21 = sphi %s644_s21, %s22_s21   ;;  %s600_s20 = sphi %s642_s20, %s766_s20   ;;  %s596_s19 = sphi %s640_s19, %s765_s19   ;;  %s592_s0 = sphi %s638_s0, %s764_s0   ;;  %s588_s18 = sphi %s636_s18, %s763_s18   ;;  %s584_s17 = sphi %s634_s17, %s762_s17  }
  0x14   : > { %s37_s24 = sadd.s32 1, %s600_s20  ;;  %s118_s25 = sadd.s32 1, %s592_s0 }
  0x15   : > { %p39_p5 = scmp.ge.s32.totalorder %s37_s24, 3  ;;  %p128_p6 = scmp.ne.s32.totalorder %s592_s0, %s588_s18 }
  0x16   : > { %p129_p7 = scmp.eq.s32.totalorder %s434_s22, 2  ;;  %p134_p8 = scmp.ne.s32.totalorder %s588_s18, %s584_s17 }
  0x17   : > { %s768_s24 = smov (%p39_p5, %s37_s24), 0  ;;  %p135_p10 = scmp.eq.s32.totalorder %s435_s23, 2 }
  0x18   : > { %p674_p9 = por %p129_p7, %p128_p6  ;;  %s114_s27 = ssub.s32 %s600_s20, %s768_s24 }
  0x19   : > { %p438_p11 = scmp.ge.s32.totalorder %s604_s21, 1  ;;  %p116_p12 = scmp.eq.s32.totalorder %s114_s27, 0 }
  0x1a   : > { %p681_p13 = por %p135_p10, %p134_p8  ;;  %p185_p0 = scmp.lt.s32.totalorder %s604_s21, 4 }
  0x1b   : > { %s687_s29 = scalar_select %p116_p12, %s592_s0, %s118_s25  }
  0x1c   : > { %p186_p1 = pnand %p438_p11, %p185_p0 }
  0x1d   : > { %p224_p2 = scmp.lt.s32.totalorder (!%p186_p1), %s596_s19, 2  ;;  %s691_s30 = sld [smem:[#allocation4 + %s596_s19]] (!%p186_p1) }
  0x1e   : > { %189 = sbr.rel (%p186_p1) target bundleno = 590 (0x24e), region = 28  ;;  %s219_s13 = sand.u32 (!%p186_p1), 1, %s588_s18  }
  0x1f   : > { %s708_s14 = scalar_lea.vmem (!%p186_p1), [#allocation5], %s219_s13  ;;  %s443_s22 = sshll.u32 (!%p186_p1), %s596_s19, 4 }
  0x20   : > { %s348_s23 = sshll.u32 (!%p186_p1), %s708_s14, 4  ;;  %s610_s6 = smov (!%p186_p1), [#allocation5]   ;;  %s349_s23 = int_to_ptr.vmem [resolvable:$true] %s348_s23 }
  0x21   : > { %s530_s7 = sshll.u32 (!%p186_p1), %s610_s6, 4  ;;  %s531_s7 = int_to_ptr.vmem [resolvable:$false] %s530_s7 }
  0x22   : > { %p533_p6 = scmp.lt.s32.totalorder (!%p186_p1), %s349_s23, %s531_s7 }
  0x23   : > { %v253_v0 = vlaneseq  ;;  %v607_v1 = vmov 0   ;;  %s225_s4 = scalar_select %p224_p2, %s596_s19, 2  ;;  %v255_v3 = vstv %s691_s30  ;;  %v608_v4 = vmov -1e+30  }
  0x24   : > { %509 = vset.pattern.permute.xlu0 %v607_v1  ;;  %v609_v17 = vmov 0.0   ;;  %vm300_vm5 = vcmask 7168   ;;  %s346_s30 = scalar_lea.hbm %s759_s3, %s443_s22  ;;  %s532_s19 = scalar_lea.vmem %s531_s7, 32 }
  0x25   : > { %v694_v2 = vand.u32 127, %v253_v0  ;;  %s439_s5 = sshll.u32 %s225_s4, 2  ;;  %s440_s9 = sshll.u32 %s225_s4, 3  ;;  %252 = vst [vmem:[%s708_s14] sm:$0x1] %v609_v17 }
  0x26   : > { %s230_s8 = scalar_lea.vmem %s757_s1, %s439_s5  ;;  %s243_s12 = scalar_lea.vmem %s758_s2, %s440_s9 }
  0x27   : > { %vm256_vm0 = vcmp.lt.s32.totalorder %v694_v2, %v255_v3  ;;  %v264_v6 = vld [vmem:[%s230_s8] sm:$0xf]  ;;  %vm324_vm6 = vcmp.eq.s32.totalorder %v694_v2, 0  ;;  %vm327_vm7 = vcmp.eq.s32.totalorder %v694_v2, 1  ;;  %s334_s4 = scalar_lea.sflag [#allocation6], %s219_s13  ;;  %s526_s5 = scalar_lea.vmem %s349_s23, 16 }
  0x28   : > { %v257_v5 = vsel %vm256_vm0, 0.0, %v608_v4  ;;  %v265_v7 = vunpack.c.l.bf16 %v264_v6  ;;  %v266_v10 = vld [vmem:[%s243_s12] sm:$0xff]  ;;  %p527_p3 = scmp.ne.s32.totalorder %s349_s23, %s526_s5  ;;  %p534_p7 = scmp.lt.s32.totalorder %s532_s19, %s526_s5 }
  0x29   : > { %258 = vst [vmem:[#allocation2] sm:$0x1] %v257_v5  ;;  %vm294_vm2 = vcmp.ge.s32.totalorder %v266_v10, 0  ;;  %vm296_vm3 = vcmp.lt.s32.totalorder %v266_v10, %v255_v3 }
  0x2a   : > { %vm297_vm4 = vmand %vm294_vm2, %vm296_vm3  ;;  %p528_p4 = pnand %p527_p3, %p674_p9  ;;  %p535_p8 = por %p534_p7, %p533_p6 }
  0x2b   : > { %v442_v25 = vsel %vm297_vm4, 1.0, %v609_v17 }
  0x2c   : > { %v313_v27 = vsel %vm300_vm5, %v442_v25, 0.0  ;;  %v323_v45 = vld [vmem:[%s708_s14] sm:$0x1]  ;;  %p529_p5 = pneg %p528_p4 }
  0x2e   : > { %p536_p10 = pnand %p535_p8, %p529_p5 }
  0x30   : > { %v441_v8 = vld [vmem:[#allocation2] ss:$0 sm:$0xff] }
  0x31   : > { %v274_v9 = vadd.f32 %v441_v8, %v265_v7 }
  0x33   : > { %275 = vmax.xlane.f32.xlu0 %v274_v9 }
  0x49   : > { %288 = vperm.xlu0 %509, %v266_v10  }
  0xbc   : > { %v276_v11 = vpop.xlane.xlu0 %275 }
  0xbd   : > { %v277_v12 = vsub.f32 %v274_v9, %v276_v11 }
  0xbf   : > { %v278_v13 = vmul.f32 1.442695, %v277_v12 }
  0xc1   : > { %510 = vpow2.f32 %v278_v13 }
  0xc4   : > { %v289_v14 = vpop.permute.xlu0 %288 }
  0xc5   : > { %vm290_vm1 = vcmp.eq.s32.totalorder %v694_v2, %v289_v14 }
  0xc6   : > { %v291_v16 = vsel %vm290_vm1, %v265_v7, 0.0 }
  0xce   : > { %v511_v15 = vpop.eup %510 }
  0xcf   : > { %280 = vadd.xlane.f32.xlu1 %v511_v15 }
  0xd3   : > { %292 = vadd.xlane.f32.xlu1 %v291_v16 }
 0x158   : > { %v281_v18 = vpop.xlane.xlu1 %280 }
 0x159   : > { %512 = vlog2.f32 %v281_v18 }
 0x15c   : > { %v293_v21 = vpop.xlane.xlu1 %292 }
 0x166   : > { %v513_v19 = vpop.eup %512 }
 0x167   : > { %v283_v20 = vmul.f32 0.6931472, %v513_v19 }
 0x169   : > { %v284_v22 = vadd.f32 %v283_v20, %v276_v11 }
 0x16b   : > { %v298_v23 = vsub.f32 %v284_v22, %v293_v21 }
 0x16d   : > { %v299_v24 = vsel %vm297_vm4, %v298_v23, 0.0 }
 0x16e   : > { %v301_v26 = vsel %vm300_vm5, %v299_v24, 0.0 }
 0x16f   : > { %302 = vadd.xlane.f32.xlu1 %v301_v26 }
 0x173   : > { %314 = vadd.xlane.f32.xlu1 %v313_v27 }
 0x1f8   : > { %v303_v28 = vpop.xlane.xlu1 %302 }
 0x1f9   : > { %v304_v29 = vrot.slane %v303_v28, 4 }
 0x1fb   : > { %v305_v30 = vadd.f32 %v304_v29, %v303_v28 }
 0x1fc   : > { %v315_v31 = vpop.xlane.xlu1 %314 }
 0x1fd   : > { %v306_v32 = vrot.slane %v305_v30, 2  ;;  %v316_v33 = vrot.slane %v315_v31, 4 }
 0x1ff   : > { %v317_v34 = vadd.f32 %v316_v33, %v315_v31  ;;  %v307_v35 = vadd.f32 %v306_v32, %v305_v30 }
 0x201   : > { %v318_v36 = vrot.slane %v317_v34, 2  ;;  %v308_v37 = vrot.slane %v307_v35, 1 }
 0x203   : > { %v319_v38 = vadd.f32 %v318_v36, %v317_v34  ;;  %v309_v39 = vadd.f32 %v308_v37, %v307_v35 }
 0x205   : > { %446 = vpush %v309_v39  ;;  %v320_v40 = vrot.slane %v319_v38, 1 }
 0x207   : > { %v321_v41 = vadd.f32 %v320_v40, %v319_v38 }
 0x209   : > { %448 = vpush %v321_v41 }
 0x236   : > { %s447_s15 = spop %446 }
 0x237   : > { %v325_v42 = vstv %s447_s15 }
 0x238   : > { %v326_v44 = vsel %vm324_vm6, %v325_v42, 0.0 }
 0x23a   : > { %s449_s16 = spop %448 }
 0x23b   : > { %v328_v43 = vstv %s449_s16 }
 0x23c   : > { %v329_v46 = vsel %vm327_vm7, %v328_v43, 0.0 }
 0x23d   : > { %v330_v47 = vadd.f32 %v329_v46, %v326_v44 }
 0x23f   : > { %v331_v48 = vadd.f32 %v330_v47, %v323_v45 }
 0x241   : > { %332 = vst [vmem:[%s708_s14] sm:$0x1] %v331_v48 }
 0x242   : > { %539 = shalt.err (!%p536_p10)
}
 0x243   : > { %s540_s8 = scalar_lea.hbm %s346_s30, 16  ;;  %s544_s11 = scalar_lea.hbm %s759_s3, 48 }
 0x244   : > { %p541_p11 = scmp.ne.s32.totalorder %s346_s30, %s540_s8  ;;  %p545_p1 = scmp.lt.s32.totalorder %s346_s30, %s759_s3 }
 0x245   : > { %p546_p2 = scmp.lt.s32.totalorder %s544_s11, %s540_s8 }
 0x246   : > { %p542_p12 = pnand %p541_p11, %p674_p9 }
 0x247   : > { %p547_p3 = por %p546_p2, %p545_p1 }
 0x248   : > { %p543_p0 = pneg %p542_p12 }
 0x24a   : > { %p548_p4 = pnand %p547_p3, %p543_p0 }
 0x24c   : > { %551 = shalt.err (!%p548_p4)
}
 0x24d   : > { %450 = dma.vmem_to_hbm [thread:$0]  (%p674_p9), %s349_s23, 16, %s346_s30, %s334_s4  }
 0x24e PF: > { %p456_p5 = scmp.ge.s32.totalorder %s604_s21, 2  ;;  %s360_s14 = sand.u32 1, %s584_s17  }
 0x24f   : > { %s361_s15 = scalar_lea.sflag [#allocation6], %s360_s14 }
 0x250   : > { %p453_p6 = pnand %p456_p5, %p681_p13 }
 0x252   : > { %p454_p7 = pneg %p453_p6 }
 0x254   : > { %579 = dma.done.wait (%p454_p7), %s361_s15, 16  }
 0x255   : > { %581 = vsyncadd (%p454_p7), %s361_s15, 4294967280  ;;  %s22_s21 = sadd.s32 1, %s604_s21   ;;  %s762_s17 = smov %s588_s18 }
 0x256   : > { %p19_p8 = scmp.ge.s32.totalorder %s22_s21, 5   ;;  %s763_s18 = smov %s592_s0 }
 0x257   : > { %s764_s0 = smov %s687_s29  ;;  %s765_s19 = smov %s600_s20 }
 0x258   : > { %s766_s20 = smov %s768_s24  ;;  %21 = sbr.rel (!%p19_p8) target bundleno = 19 (0x13), region = 74 }
 0x25d   :  { %365 = vsyncpa [#allocation6], 1 }
 0x25e   :  { %367 = vsyncpa [#allocation6 + $0x1], 1 }

</bundles_post_ra>
